<compile_context>
chip_gen: v5e
topology: v5e:2x2
jax: 0.10.0
libtpu: 0.0.40
codegen_flags: <defaults>
</compile_context>

<pallas_src>
import functools

import jax
import jax.numpy as jnp
from jax import lax
from jax.experimental import pallas as pl
from jax.experimental.pallas import tpu as pltpu


def _round_up(x: int, m: int) -> int:
    return (x + m - 1) // m * m


def decode2labels_kernel(x_ref, w_ref, o_ref, acc_ref, *, n_valid: int):
    k = pl.program_id(1)

    @pl.when(k == 0)
    def _init():
        acc_ref[...] = jnp.zeros_like(acc_ref)

    # logits += x @ w.T : contract the shared last (lane) axis of both operands so the
    # (D_out, D_in) PyTorch weight layout feeds the MXU directly (no transpose pass).
    acc_ref[...] += lax.dot_general(
        x_ref[...], w_ref[...],
        dimension_numbers=(((1,), (1,)), ((), ())),
        preferred_element_type=jnp.float32,
    )

    @pl.when(k == pl.num_programs(1) - 1)
    def _finalize():
        logits = acc_ref[...]                      # (TB, N_pad), f32
        n_pad = logits.shape[-1]
        if n_valid < n_pad:                        # static: mask padded label lanes
            col = lax.broadcasted_iota(jnp.int32, logits.shape, 1)
            logits = jnp.where(col < n_valid, logits, -jnp.inf)
        # log_softmax(z) = (z - m) - log(sum(exp(z - m))), m = max(z) (stable form).
        m = jnp.max(logits, axis=-1, keepdims=True)
        shifted = logits - m
        lse = jnp.log(jnp.sum(jnp.exp(shifted), axis=-1, keepdims=True))
        o_ref[...] = (shifted - lse).astype(o_ref.dtype)


def decode2labels(x, w, *, compute_dtype=jnp.float32, tb_max=256, tk_max=512):
    """Linear(bias=False) + LogSoftmax(dim=-1).

    x: (B, D_in); w: (D_out, D_in) in PyTorch nn.Linear layout.
    Returns (B, D_out) float32 log-probabilities.
    """
    B, D_in = x.shape
    D_out, d_in_w = w.shape
    assert d_in_w == D_in, "weight / input feature mismatch"

    # Tile sizing: sublane-aligned batch tile, lane-aligned (128-multiple) K tile,
    # lane-dense padded label axis. Small enough to fit v7x's 64 MiB VMEM with room.
    TB = min(tb_max, _round_up(B, 8))
    B_pad = _round_up(B, TB)
    TK = min(tk_max, _round_up(D_in, 128))
    K_pad = _round_up(_round_up(D_in, 128), TK)
    N_pad = _round_up(D_out, 128)

    if jnp.dtype(compute_dtype) != x.dtype:
        # bf16 into the MXU with f32 accumulation; in production keep the weight stored
        # in compute_dtype so this cast is not a per-call HBM pass.
        x = x.astype(compute_dtype)
        w = w.astype(compute_dtype)

    if (B_pad, K_pad) != (B, D_in):
        x = jnp.pad(x, ((0, B_pad - B), (0, K_pad - D_in)))
    if (N_pad, K_pad) != (D_out, D_in):
        w = jnp.pad(w, ((0, N_pad - D_out), (0, K_pad - D_in)))

    grid = (B_pad // TB, K_pad // TK)
    itemsize = jnp.dtype(compute_dtype).itemsize
    cost = pl.CostEstimate(
        flops=2 * B_pad * K_pad * N_pad,
        transcendentals=B_pad * N_pad,
        bytes_accessed=(B_pad * K_pad + N_pad * K_pad) * itemsize + B_pad * N_pad * 4,
    )

    out = pl.pallas_call(
        functools.partial(decode2labels_kernel, n_valid=D_out),
        out_shape=jax.ShapeDtypeStruct((B_pad, N_pad), jnp.float32),
        grid_spec=pltpu.PrefetchScalarGridSpec(
            num_scalar_prefetch=0,
            grid=grid,
            in_specs=[
                pl.BlockSpec((TB, TK), lambda i, k: (i, k)),      # activations tile
                pl.BlockSpec((N_pad, TK), lambda i, k: (0, k)),   # weight slab (all labels)
            ],
            out_specs=pl.BlockSpec((TB, N_pad), lambda i, k: (i, 0)),
            scratch_shapes=[pltpu.VMEM((TB, N_pad), jnp.float32)],
        ),
        compiler_params=pltpu.CompilerParams(
            dimension_semantics=("parallel", "arbitrary"),
        ),
        cost_estimate=cost,
    )(x, w)

    return out[:B, :D_out]


def _reference(x, w):
    return jax.nn.log_softmax(x @ w.T, axis=-1)


if __name__ == "__main__":
    key = jax.random.PRNGKey(0)
    k1, k2, k3, k4 = jax.random.split(key, 4)

    # Case 1: small shapes consistent with the module (batch=8, hidden=32, labels=16).
    B, D_in, D_out = 8, 32, 16
    bound = 1.0 / jnp.sqrt(jnp.float32(D_in))
    x = jax.random.normal(k1, (B, D_in), dtype=jnp.float32)
    w = jax.random.uniform(k2, (D_out, D_in), jnp.float32, -bound, bound)
    out = jax.block_until_ready(decode2labels(x, w))
    assert out.shape == (B, D_out)
    assert jnp.allclose(out, _reference(x, w), atol=1e-5, rtol=1e-5), "case1 mismatch"

    # Case 2: exercises multi-step K accumulation, padding and batch tiling.
    B2, D_in2, D_out2 = 24, 640, 20
    bound2 = 1.0 / jnp.sqrt(jnp.float32(D_in2))
    x2 = jax.random.normal(k3, (B2, D_in2), dtype=jnp.float32)
    w2 = jax.random.uniform(k4, (D_out2, D_in2), jnp.float32, -bound2, bound2)
    out2 = jax.block_until_ready(decode2labels(x2, w2))
    assert out2.shape == (B2, D_out2)
    assert jnp.allclose(out2, _reference(x2, w2), atol=5e-3, rtol=5e-3), "case2 mismatch"

    # bf16 MXU path (f32 accumulation) — looser tolerance on the logits.
    out_bf16 = jax.block_until_ready(
        decode2labels(x2, w2, compute_dtype=jnp.bfloat16))
    assert jnp.allclose(out_bf16, _reference(x2, w2), atol=5e-2, rtol=5e-2), "bf16 mismatch"

    print("KERNEL_OK")
</pallas_src>

<mosaic_0001>
module attributes {stable_mosaic.version = 11 : i64} {
  func.func @decode2labels_kernel(%arg0: i32, %arg1: i32, %arg2: memref<8x128xf32, #tpu.memory_space<vmem>>, %arg3: memref<128x128xf32, #tpu.memory_space<vmem>>, %arg4: memref<8x128xf32, #tpu.memory_space<vmem>>, %arg5: memref<8x128xf32, #tpu.memory_space<vmem>>) attributes {dimension_semantics = [#tpu.dimension_semantics<parallel>, #tpu.dimension_semantics<arbitrary>], iteration_bounds = array<i64: 1, 1>, scalar_prefetch = 0 : i64, scratch_operands = 1 : i64, tpu.core_type = #tpu.core_type<tc>, window_params = [{transform_indices = @transform_0, window_bounds = array<i64: 8, 128>}, {transform_indices = @transform_1, window_bounds = array<i64: 128, 128>}, {transform_indices = @transform_2, window_bounds = array<i64: 8, 128>}]} {
    %c0_i32 = arith.constant 0 : i32
    %0 = arith.cmpi eq, %arg1, %c0_i32 : i32
    %1 = arith.extui %0 : i1 to i32
    %c0_i32_0 = arith.constant 0 : i32
    %2 = arith.cmpi ne, %1, %c0_i32_0 : i32
    scf.if %2 {
      %cst_10 = arith.constant 0.000000e+00 : f32
      %12 = vector.broadcast %cst_10 : f32 to vector<8x128xf32>
      %c0_11 = arith.constant 0 : index
      %c0_12 = arith.constant 0 : index
      %13 = vector.load %arg5[%c0_11, %c0_12] : memref<8x128xf32, #tpu.memory_space<vmem>>, vector<8x128xf32>
      tpu.vector_store %arg5[%c0_11, %c0_12], %12 {strides = array<i32>} : memref<8x128xf32, #tpu.memory_space<vmem>>, vector<8x128xf32>,
    } else {
    }
    %c0 = arith.constant 0 : index
    %c0_1 = arith.constant 0 : index
    %3 = vector.load %arg5[%c0, %c0_1] : memref<8x128xf32, #tpu.memory_space<vmem>>, vector<8x128xf32>
    %c0_2 = arith.constant 0 : index
    %c0_3 = arith.constant 0 : index
    %4 = vector.load %arg2[%c0_2, %c0_3] : memref<8x128xf32, #tpu.memory_space<vmem>>, vector<8x128xf32>
    %c0_4 = arith.constant 0 : index
    %c0_5 = arith.constant 0 : index
    %5 = vector.load %arg3[%c0_4, %c0_5] : memref<128x128xf32, #tpu.memory_space<vmem>>, vector<128x128xf32>
    %cst = arith.constant dense<0.000000e+00> : vector<8x128xf32>
    %6 = tpu.matmul %4, %5, %cst {dimension_numbers = #tpu.dot_dimension_numbers<[1], [1], [0], [0], [0, 0, 1, 0], [], []>} : vector<8x128xf32>, vector<128x128xf32>, vector<8x128xf32> -> vector<8x128xf32>
    %7 = arith.addf %3, %6 : vector<8x128xf32>
    %c0_6 = arith.constant 0 : index
    %c0_7 = arith.constant 0 : index
    %8 = vector.load %arg5[%c0_6, %c0_7] : memref<8x128xf32, #tpu.memory_space<vmem>>, vector<8x128xf32>
    tpu.vector_store %arg5[%c0_6, %c0_7], %7 {strides = array<i32>} : memref<8x128xf32, #tpu.memory_space<vmem>>, vector<8x128xf32>,
    %c0_i32_8 = arith.constant 0 : i32
    %9 = arith.cmpi eq, %arg1, %c0_i32_8 : i32
    %10 = arith.extui %9 : i1 to i32
    %c0_i32_9 = arith.constant 0 : i32
    %11 = arith.cmpi ne, %10, %c0_i32_9 : i32
    scf.if %11 {
      %c0_10 = arith.constant 0 : index
      %c0_11 = arith.constant 0 : index
      %12 = vector.load %arg5[%c0_10, %c0_11] : memref<8x128xf32, #tpu.memory_space<vmem>>, vector<8x128xf32>
      %13 = tpu.iota {dimensions = array<i32: 1>} : vector<8x128xi32>
      %c16_i32 = arith.constant 16 : i32
      %14 = vector.broadcast %c16_i32 : i32 to vector<8x128xi32>
      %15 = arith.cmpi slt, %13, %14 : vector<8x128xi32>
      %cst_12 = arith.constant 0xFF800000 : f32
      %16 = vector.broadcast %cst_12 : f32 to vector<8x128xf32>
      %17 = arith.select %15, %12, %16 : vector<8x128xi1>, vector<8x128xf32>
      %cst_13 = arith.constant dense<0xFF800000> : vector<8xf32>
      %18 = vector.multi_reduction <maximumf>, %17, %cst_13 [1] : vector<8x128xf32> to vector<8xf32>
      %19 = vector.shape_cast %18 : vector<8xf32> to vector<8x1xf32>
      %20 = vector.broadcast %19 : vector<8x1xf32> to vector<8x128xf32>
      %21 = arith.subf %17, %20 : vector<8x128xf32>
      %22 = math.exp %21 : vector<8x128xf32>
      %cst_14 = arith.constant dense<0.000000e+00> : vector<8xf32>
      %23 = vector.multi_reduction <add>, %22, %cst_14 [1] : vector<8x128xf32> to vector<8xf32>
      %24 = vector.shape_cast %23 : vector<8xf32> to vector<8x1xf32>
      %25 = math.log %24 : vector<8x1xf32>
      %26 = vector.broadcast %25 : vector<8x1xf32> to vector<8x128xf32>
      %27 = arith.subf %21, %26 : vector<8x128xf32>
      %c0_15 = arith.constant 0 : index
      %c0_16 = arith.constant 0 : index
      %28 = vector.load %arg4[%c0_15, %c0_16] : memref<8x128xf32, #tpu.memory_space<vmem>>, vector<8x128xf32>
      tpu.vector_store %arg4[%c0_15, %c0_16], %27 {strides = array<i32>} : memref<8x128xf32, #tpu.memory_space<vmem>>, vector<8x128xf32>,
    } else {
    }
    return
  }
  func.func @transform_0(%arg0: i32, %arg1: i32) -> (i32, i32) {
    %c0_i32 = arith.constant 0 : i32
    return %arg0, %arg1 : i32, i32
  }
  func.func @transform_1(%arg0: i32, %arg1: i32) -> (i32, i32) {
    %c0_i32 = arith.constant 0 : i32
    %c0_i32_0 = arith.constant 0 : i32
    return %c0_i32, %arg1 : i32, i32
  }
  func.func @transform_2(%arg0: i32, %arg1: i32) -> (i32, i32) {
    %c0_i32 = arith.constant 0 : i32
    %c0_i32_0 = arith.constant 0 : i32
    return %arg0, %c0_i32 : i32, i32
  }
}

</mosaic_0001>

<bundles_post_ra>
// kernel: tpu_custom_call.1
= control target key start
LH: loop header
LB: loop body
LE: loop exit
PB: predicated region body
PF: predicated region fallthrough
CT: control target
= control target key end

     0   :  { %7 = vsyncpa [#allocation4], 0  ;;  %s240_s0 = inlined_call_operand.hbm [shape: f32[8,128], index: 0, kind: input, shape index: {}]   ;;  %s241_s1 = inlined_call_operand.hbm [shape: f32[128,128], index: 1, kind: input, shape index: {}]   ;;  %s242_s2 = inlined_call_operand.hbm [shape: f32[8,128], index: 2, kind: output, shape index: {}]  }
   0x1   :  { %8 = vsyncpa [#allocation7], 0 }
   0x2   :  { %9 = vsyncpa [#allocation5], 0  ;;  %s15_s11 = sshll.u32 %s240_s0, 4  ;;  %s211_s12 = smov [#allocation3]   ;;  %s16_s11 = int_to_ptr.hbm [resolvable:$true] %s15_s11 }
   0x3   :  { %s17_s13 = sshll.u32 %s211_s12, 4  ;;  %s25_s16 = sshll.u32 %s241_s1, 4  ;;  %s18_s13 = int_to_ptr.vmem [resolvable:$true] %s17_s13  ;;  %s26_s16 = int_to_ptr.hbm [resolvable:$true] %s25_s16 }
   0x4   :  { %20 = dma.hbm_to_vmem [thread:$0]  %s16_s11, 128, %s18_s13, [#allocation4]  }
   0x5   :  { %s212_s17 = smov [#allocation6]   ;;  %s213_s19 = smov 128  }
   0x6   :  { %s27_s18 = sshll.u32 %s212_s17, 4  ;;  %s214_s20 = smov 8   ;;  %s28_s18 = int_to_ptr.vmem [resolvable:$true] %s27_s18 }
   0x7   :  { %33 = dma.hbm_to_vmem [thread:$0]  %s26_s16, 2048, %s28_s18, [#allocation7], %s213_s19, %s213_s19, %s214_s20  }
   0x8   :  { %205 = dma.done.wait [#allocation4], 128  }
   0x9   :  { %206 = vsyncadd [#allocation4], 4294967168 }
   0xa   :  { %207 = dma.done.wait [#allocation7], 2048  }
   0xb   :  { %208 = vsyncadd [#allocation7], 4294965248  ;;  %v64_v0 = vld [vmem:[#allocation6 + $0x78] sm:$0xff]  ;;  %v63_v1 = vld [vmem:[#allocation6 + $0x70] sm:$0xff]  ;;  %v91_v17 = vlaneseq  ;;  %s215_s0 = smov [#allocation8]   ;;  %s113_s23 = sshll.u32 %s242_s2, 4  ;;  %s114_s23 = int_to_ptr.hbm [resolvable:$true] %s113_s23 }
   0xc   :  { %65 = vmatpush.xpose.msra.mxu0 %v64_v0  ;;  %v62_v2 = vld [vmem:[#allocation6 + $0x68] sm:$0xff]  ;;  %v61_v3 = vld [vmem:[#allocation6 + $0x60] sm:$0xff]  ;;  %v60_v4 = vld [vmem:[#allocation6 + $0x58] sm:$0xff]  ;;  %s111_s1 = sshll.u32 %s215_s0, 4  ;;  %s112_s1 = int_to_ptr.vmem [resolvable:$true] %s111_s1 }
   0xd   :  { %v59_v5 = vld [vmem:[#allocation6 + $0x50] sm:$0xff]  ;;  %v58_v6 = vld [vmem:[#allocation6 + $0x48] sm:$0xff]  ;;  %v57_v7 = vld [vmem:[#allocation6 + $0x40] sm:$0xff]  ;;  %v92_v18 = vand.u32 127, %v91_v17 }
   0xe   :  { %v56_v8 = vld [vmem:[#allocation6 + $0x38] sm:$0xff]  ;;  %v55_v9 = vld [vmem:[#allocation6 + $0x30] sm:$0xff]  ;;  %v54_v10 = vld [vmem:[#allocation6 + $0x28] sm:$0xff] }
   0xf   :  { %v53_v11 = vld [vmem:[#allocation6 + $0x20] sm:$0xff]  ;;  %v52_v12 = vld [vmem:[#allocation6 + $0x18] sm:$0xff]  ;;  %v51_v13 = vld [vmem:[#allocation6 + $0x10] sm:$0xff]  ;;  %vm93_vm0 = vcmp.lt.s32.totalorder %v92_v18, 16 }
  0x10   :  { %66 = vmatpush.xpose.msra.mxu0 %v63_v1  ;;  %v50_v14 = vld [vmem:[#allocation6 + $0x8] sm:$0xff]  ;;  %v49_v15 = vld [vmem:[#allocation6] sm:$0xff]  ;;  %v48_v16 = vld [vmem:[#allocation3] sm:$0xff] }
  0x14   :  { %67 = vmatpush.xpose.msra.mxu0 %v62_v2 }
  0x18   :  { %68 = vmatpush.xpose.msra.mxu0 %v61_v3 }
  0x1c   :  { %69 = vmatpush.xpose.msra.mxu0 %v60_v4 }
  0x20   :  { %70 = vmatpush.xpose.msra.mxu0 %v59_v5 }
  0x24   :  { %71 = vmatpush.xpose.msra.mxu0 %v58_v6 }
  0x28   :  { %72 = vmatpush.xpose.msra.mxu0 %v57_v7 }
  0x2c   :  { %73 = vmatpush.xpose.msra.mxu0 %v56_v8 }
  0x30   :  { %74 = vmatpush.xpose.msra.mxu0 %v55_v9 }
  0x34   :  { %75 = vmatpush.xpose.msra.mxu0 %v54_v10 }
  0x38   :  { %76 = vmatpush.xpose.msra.mxu0 %v53_v11 }
  0x3c   :  { %77 = vmatpush.xpose.msra.mxu0 %v52_v12 }
  0x40   :  { %78 = vmatpush.xpose.msra.mxu0 %v51_v13 }
  0x44   :  { %79 = vmatpush.xpose.msra.mxu0 %v50_v14 }
  0x48   :  { %80 = vmatpush.xpose.msra.mxu0 %v49_v15 }
  0x4b   :  { %81 = vmatmul.f32.vlgmr.msra.gmra.mxu0 %v48_v16 }
  0xc8   :  { %v82_v19 = vpop.f32.mrf.mxu0 }
  0xc9   :  { %v94_v20 = vsel %vm93_vm0, %v82_v19, -inf }
  0xca   :  { %95 = vmax.xlane.f32.xlu0 %v94_v20 }
 0x13d   :  { %v96_v21 = vpop.xlane.xlu0 %95 }
 0x13e   :  { %v97_v22 = vsub.f32 %v94_v20, %v96_v21 }
 0x140   :  { %v98_v23 = vmul.f32 1.442695, %v97_v22 }
 0x142   :  { %129 = vpow2.f32 %v98_v23 }
 0x148   :  { %v130_v24 = vpop.eup %129 }
 0x149   :  { %100 = vadd.xlane.f32.xlu0 %v130_v24 }
 0x1bc   :  { %v101_v25 = vpop.xlane.xlu0 %100 }
 0x1bd   :  { %131 = vlog2.f32 %v101_v25 }
 0x1c3   :  { %v132_v26 = vpop.eup %131 }
 0x1c4   :  { %v103_v27 = vmul.f32 0.6931472, %v132_v26 }
 0x1c6   :  { %v104_v28 = vsub.f32 %v97_v22, %v103_v27 }
 0x1c8   :  { %105 = vst [vmem:[#allocation8] sm:$0xff] %v104_v28 }
 0x1c9   :  { %116 = dma.vmem_to_hbm [thread:$0]  %s112_s1, 128, %s114_s23, [#allocation5]  }
 0x1ca   :  { %209 = dma.done.wait [#allocation5], 128  }
 0x1cb   :  { %210 = vsyncadd [#allocation5], 4294967168 }
 0x1cc   :  { %121 = vsyncpa [#allocation4], 1 }
 0x1cd   :  { %122 = vsyncpa [#allocation7], 1 }
 0x1ce   :  { %123 = vsyncpa [#allocation5], 1 }

</bundles_post_ra>
